<compile_context>
chip_gen: v7x
topology: tpu7x:2x2x1
jax: 0.10.0
libtpu: 0.0.40
codegen_flags: <defaults>
</compile_context>

<pallas_src>
import jax
import jax.numpy as jnp
from jax.experimental import pallas as pl
from jax.experimental.pallas import tpu as pltpu

EPS = 1e-05
DEPTH = 2                       # module default; kernel is specialized to depth=2
NUM_NODES = 2 ** DEPTH - 1      # 3 internal nodes
NUM_LEAVES = 2 ** DEPTH         # 4 leaves


def _find_parent(idx):
    return (idx - 1) // 2


def _find_path(idx):
    if idx == 0:
        return []
    return [idx] + _find_path((idx - 1) // 2)


# ---------------------------------------------------------------------------
# Pallas kernel: one (batch block, L block) tile per grid step, natural layout.
# ---------------------------------------------------------------------------
def _tree_kernel(x_ref, onehot_ref, thr_ref, leaf_ref, out_ref):
    # x_ref:      (B, Lb, D)
    # onehot_ref: (B, D, NUM_NODES)
    # thr_ref:    (B, 1, NUM_NODES)
    # leaf_ref:   (B, NUM_LEAVES, Y)
    # out_ref:    (B, Lb, Y)
    x = x_ref[...]
    oh = onehot_ref[...]
    thr = thr_ref[...]
    ll = leaf_ref[...]

    # Exact feature gather as a batched one-hot matmul (MXU):
    #   xt[b, l, n] == x[b, l, split_idx[b, n]]
    xt = jnp.einsum('bld,bdn->bln', x, oh, preferred_element_type=jnp.float32)

    # All node decisions in one vectorized compare. Adding EPS to the gathered
    # columns matches torch's gather(x + EPS) exactly (the one-hot matmul is an
    # exact selection in f32).
    c = ((xt + EPS) < thr).astype(jnp.float32)          # (B, Lb, NUM_NODES), exact 0/1
    c0 = c[:, :, 0:1]
    c1 = c[:, :, 1:2]
    c2 = c[:, :, 2:3]

    # Depth-2 leaf path products; decisions are exact 0/1 so the reference's
    # status-queue multiplications are idempotent and dropped.
    w0 = c0 * c1                 # left-left
    w1 = c0 - w0                 # left-right  = c0 * (1 - c1)
    nc0 = 1.0 - c0
    w2 = nc0 * c2                # right-left
    w3 = nc0 - w2                # right-right = (1 - c0) * (1 - c2)

    out_ref[...] = (w0 * ll[:, 0:1, :] + w1 * ll[:, 1:2, :]
                    + w2 * ll[:, 2:3, :] + w3 * ll[:, 3:4, :])


def _round_up(v, m):
    return ((v + m - 1) // m) * m


def _pick_batch_block(bs, n_l, l_blk, D, Y, budget_bytes=12 << 20, max_blk=128):
    """Largest per-step batch block whose double-buffered tiles fit a conservative
    VMEM budget (safe under the default scoped VMEM limit on v5e/v6e/v7x), capped so
    the batched matmul unroll stays small, while keeping >= 2 total grid steps so the
    'parallel' axes can use both v7x TensorCores."""
    def tile_bytes(rows, cols):
        return _round_up(max(rows, 1), 8) * _round_up(max(cols, 1), 128) * 4
    per_batch = (tile_bytes(l_blk, D) + tile_bytes(D, NUM_NODES)
                 + tile_bytes(1, NUM_NODES) + tile_bytes(NUM_LEAVES, Y)
                 + tile_bytes(l_blk, Y))
    cap = max(1, budget_bytes // (2 * per_batch))       # x2 for double-buffering
    cap = min(cap, max_blk)
    if n_l < 2 and bs >= 2:
        cap = min(cap, -(-bs // 2))                     # keep at least 2 grid steps
    return int(min(bs, cap))


def decision_tree_predict(x, onehot, thresholds, leaf_labels):
    """Pallas forward pass == DecisionTree.predict(x) with per-batch fitted leaves."""
    bs, L, D = x.shape
    Y = leaf_labels.shape[-1]

    xf = x.astype(jnp.float32)                                       # (bs, L, D)
    oh = onehot.astype(jnp.float32)                                  # (bs, D, N)
    thr = thresholds.astype(jnp.float32)[:, None, :]                 # (bs, 1, N)
    leaf = leaf_labels.astype(jnp.float32)                           # (bs, NL, Y)

    # L tiling: sublane-aligned (multiple of 8), capped per-step size.
    l_blk = min(_round_up(L, 8), 512)
    L_pad = _round_up(L, l_blk)
    n_l = L_pad // l_blk

    b_blk = _pick_batch_block(bs, n_l, l_blk, D, Y)
    n_b = -(-bs // b_blk)
    bs_pad = n_b * b_blk

    if L_pad != L:
        xf = jnp.pad(xf, ((0, 0), (0, L_pad - L), (0, 0)))
    if bs_pad != bs:
        pad = bs_pad - bs
        xf = jnp.pad(xf, ((0, pad), (0, 0), (0, 0)))
        oh = jnp.pad(oh, ((0, pad), (0, 0), (0, 0)))
        thr = jnp.pad(thr, ((0, pad), (0, 0), (0, 0)))
        leaf = jnp.pad(leaf, ((0, pad), (0, 0), (0, 0)))

    out = pl.pallas_call(
        _tree_kernel,
        out_shape=jax.ShapeDtypeStruct((bs_pad, L_pad, Y), jnp.float32),
        grid_spec=pltpu.PrefetchScalarGridSpec(
            num_scalar_prefetch=0,
            grid=(n_b, n_l),                    # batch outer, L inner (params stay resident)
            in_specs=[
                pl.BlockSpec((b_blk, l_blk, D), lambda b, l: (b, l, 0)),
                pl.BlockSpec((b_blk, D, NUM_NODES), lambda b, l: (b, 0, 0)),
                pl.BlockSpec((b_blk, 1, NUM_NODES), lambda b, l: (b, 0, 0)),
                pl.BlockSpec((b_blk, NUM_LEAVES, Y), lambda b, l: (b, 0, 0)),
            ],
            out_specs=pl.BlockSpec((b_blk, l_blk, Y), lambda b, l: (b, l, 0)),
        ),
        compiler_params=pltpu.CompilerParams(
            dimension_semantics=("parallel", "parallel")),
    )(xf, oh, thr, leaf)

    return out[:bs, :L]                                              # (bs, L, Y)


# ---------------------------------------------------------------------------
# Plain-JAX parameter setup: __init__._build_tree equivalent (fit leaf labels).
# ---------------------------------------------------------------------------
def build_tree_labels(x, y, split_idx, thr):
    # x: (bs, L, D), y: (bs, L, Y), split_idx: (bs, NUM_NODES) int32,
    # thr: (bs, NUM_NODES)  ->  leaf labels (bs, NUM_LEAVES, Y)
    bs, L, _ = x.shape
    decision_lst = []
    status_queue = [jnp.ones((bs, L), x.dtype)]
    for ctr in range(NUM_NODES):
        st = status_queue.pop(0)
        idx = split_idx[:, ctr]                                           # (bs,)
        tx = jnp.take_along_axis(x + EPS, idx[:, None, None], axis=-1)[..., 0]
        d = (tx < thr[:, ctr][:, None]).astype(x.dtype) * st
        decision_lst.append(d)
        status_queue.append(st * d)
        status_queue.append(st * (1.0 - d))
    leaves = []
    for tree_ctr in range(NUM_NODES, NUM_NODES + NUM_LEAVES):
        path = _find_path(tree_ctr)
        fd = jnp.ones_like(decision_lst[0])
        for i in path:
            p = _find_parent(i)
            fd = fd * decision_lst[p] if i % 2 == 1 else fd * (1.0 - decision_lst[p])
        fd = fd[..., None]                                                # (bs, L, 1)
        node_pred = (y * fd).sum(axis=1, keepdims=True) / (
            fd.sum(axis=1, keepdims=True) + EPS)                          # (bs, 1, Y)
        leaves.append(node_pred[:, 0, :])
    return jnp.stack(leaves, axis=1)                                      # (bs, NL, Y)


# Pure-JAX reference of predict() (faithful to the torch code) for correctness checking.
def reference_predict(x, split_idx, thr, leaf_labels):
    bs, L, _ = x.shape
    decision_lst = []
    status_queue = [jnp.ones((bs, L), x.dtype)]
    for ctr in range(NUM_NODES):
        st = status_queue.pop(0)
        idx = split_idx[:, ctr]
        tx = jnp.take_along_axis(x + EPS, idx[:, None, None], axis=-1)[..., 0]
        d = (tx < thr[:, ctr][:, None]).astype(x.dtype) * st
        decision_lst.append(d)
        status_queue.append(st * d)
        status_queue.append(st * (1.0 - d))
    y_pred = 0.0
    for leaf in range(NUM_LEAVES):
        path = _find_path(NUM_NODES + leaf)
        fd = jnp.ones_like(decision_lst[0])
        for i in path:
            p = _find_parent(i)
            fd = fd * decision_lst[p] if i % 2 == 1 else fd * (1.0 - decision_lst[p])
        y_pred = y_pred + fd[..., None] * leaf_labels[:, leaf][:, None, :]
    return y_pred


if __name__ == "__main__":
    key = jax.random.PRNGKey(0)
    bs, L, D, Y = 2, 16, 8, 4
    k1, k2, k3, k4 = jax.random.split(key, 4)

    # Deterministic synthetic inputs / "parameters".
    x = jax.random.normal(k1, (bs, L, D), jnp.float32)
    y = jax.random.normal(k2, (bs, L, Y), jnp.float32)
    # auto_dims: list of NUM_NODES tensors (bs, D); only their argmax matters.
    auto_dims = jax.random.normal(k3, (NUM_NODES, bs, D), jnp.float32)
    split_idx = jnp.argmax(auto_dims, axis=-1).astype(jnp.int32).T        # (bs, NUM_NODES)
    # auto_thresholds: list of NUM_NODES tensors (bs, 1) -> packed (bs, NUM_NODES)
    thr = 0.5 * jax.random.normal(k4, (bs, NUM_NODES), jnp.float32)

    # __init__ equivalent: fit leaf labels on (x, y).
    leaf_labels = build_tree_labels(x, y, split_idx, thr)                 # (bs, 4, Y)

    # Kernel inputs.
    onehot = jax.nn.one_hot(split_idx, D, axis=1, dtype=jnp.float32)      # (bs, D, 3)

    out = decision_tree_predict(x, onehot, thr, leaf_labels)
    out = jax.block_until_ready(out)

    ref = reference_predict(x, split_idx, thr, leaf_labels)
    assert out.shape == (bs, L, Y)
    assert jnp.allclose(out, ref, atol=1e-5, rtol=1e-5), "mismatch vs JAX reference"

    print("KERNEL_OK")
</pallas_src>

<mosaic_0001>
module attributes {stable_mosaic.version = 11 : i64} {
  func.func @_tree_kernel(%arg0: i32, %arg1: i32, %arg2: memref<1x16x8xf32, #tpu.memory_space<vmem>>, %arg3: memref<1x8x3xf32, #tpu.memory_space<vmem>>, %arg4: memref<1x1x3xf32, #tpu.memory_space<vmem>>, %arg5: memref<1x4x4xf32, #tpu.memory_space<vmem>>, %arg6: memref<1x16x4xf32, #tpu.memory_space<vmem>>) attributes {dimension_semantics = [#tpu.dimension_semantics<parallel>, #tpu.dimension_semantics<parallel>], iteration_bounds = array<i64: 2, 1>, scalar_prefetch = 0 : i64, scratch_operands = 0 : i64, tpu.core_type = #tpu.core_type<tc>, window_params = [{transform_indices = @transform_0, window_bounds = array<i64: 1, 16, 8>}, {transform_indices = @transform_1, window_bounds = array<i64: 1, 8, 3>}, {transform_indices = @transform_2, window_bounds = array<i64: 1, 1, 3>}, {transform_indices = @transform_3, window_bounds = array<i64: 1, 4, 4>}, {transform_indices = @transform_4, window_bounds = array<i64: 1, 16, 4>}]} {
    %c0 = arith.constant 0 : index
    %c0_0 = arith.constant 0 : index
    %c0_1 = arith.constant 0 : index
    %0 = vector.load %arg2[%c0, %c0_0, %c0_1] : memref<1x16x8xf32, #tpu.memory_space<vmem>>, vector<1x16x8xf32>
    %c0_2 = arith.constant 0 : index
    %c0_3 = arith.constant 0 : index
    %c0_4 = arith.constant 0 : index
    %1 = vector.load %arg3[%c0_2, %c0_3, %c0_4] : memref<1x8x3xf32, #tpu.memory_space<vmem>>, vector<1x8x3xf32>
    %c0_5 = arith.constant 0 : index
    %c0_6 = arith.constant 0 : index
    %c0_7 = arith.constant 0 : index
    %2 = vector.load %arg4[%c0_5, %c0_6, %c0_7] : memref<1x1x3xf32, #tpu.memory_space<vmem>>, vector<1x1x3xf32>
    %c0_8 = arith.constant 0 : index
    %c0_9 = arith.constant 0 : index
    %c0_10 = arith.constant 0 : index
    %3 = vector.load %arg5[%c0_8, %c0_9, %c0_10] : memref<1x4x4xf32, #tpu.memory_space<vmem>>, vector<1x4x4xf32>
    "tpu.trace_start"() <{level = 10 : i32, message = "bld,bdn->bln"}> : () -> ()
    %cst = arith.constant dense<0.000000e+00> : vector<1x16x3xf32>
    %4 = tpu.matmul %0, %1, %cst {dimension_numbers = #tpu.dot_dimension_numbers<[2], [1], [1], [2], [0, 0, 0, 1, 1, 2], [0], [0]>} : vector<1x16x8xf32>, vector<1x8x3xf32>, vector<1x16x3xf32> -> vector<1x16x3xf32>
    "tpu.trace_stop"() : () -> ()
    %cst_11 = arith.constant 9.99999974E-6 : f32
    %5 = vector.broadcast %cst_11 : f32 to vector<1x16x3xf32>
    %6 = arith.addf %4, %5 : vector<1x16x3xf32>
    %7 = vector.broadcast %2 : vector<1x1x3xf32> to vector<1x16x3xf32>
    %8 = arith.cmpf olt, %6, %7 : vector<1x16x3xf32>
    %9 = arith.extui %8 : vector<1x16x3xi1> to vector<1x16x3xi32>
    %10 = arith.sitofp %9 : vector<1x16x3xi32> to vector<1x16x3xf32>
    %11 = vector.extract_strided_slice %10 {offsets = [0, 0, 0], sizes = [1, 16, 1], strides = [1, 1, 1]} : vector<1x16x3xf32> to vector<1x16x1xf32>
    %12 = vector.extract_strided_slice %10 {offsets = [0, 0, 1], sizes = [1, 16, 1], strides = [1, 1, 1]} : vector<1x16x3xf32> to vector<1x16x1xf32>
    %13 = vector.extract_strided_slice %10 {offsets = [0, 0, 2], sizes = [1, 16, 1], strides = [1, 1, 1]} : vector<1x16x3xf32> to vector<1x16x1xf32>
    %14 = arith.mulf %11, %12 : vector<1x16x1xf32>
    %15 = arith.subf %11, %14 : vector<1x16x1xf32>
    %cst_12 = arith.constant 1.000000e+00 : f32
    %16 = vector.broadcast %cst_12 : f32 to vector<1x16x1xf32>
    %17 = arith.subf %16, %11 : vector<1x16x1xf32>
    %18 = arith.mulf %17, %13 : vector<1x16x1xf32>
    %19 = arith.subf %17, %18 : vector<1x16x1xf32>
    %20 = vector.extract_strided_slice %3 {offsets = [0, 0, 0], sizes = [1, 1, 4], strides = [1, 1, 1]} : vector<1x4x4xf32> to vector<1x1x4xf32>
    %21 = vector.broadcast %14 : vector<1x16x1xf32> to vector<1x16x4xf32>
    %22 = vector.broadcast %20 : vector<1x1x4xf32> to vector<1x16x4xf32>
    %23 = arith.mulf %21, %22 : vector<1x16x4xf32>
    %24 = vector.extract_strided_slice %3 {offsets = [0, 1, 0], sizes = [1, 1, 4], strides = [1, 1, 1]} : vector<1x4x4xf32> to vector<1x1x4xf32>
    %25 = vector.broadcast %15 : vector<1x16x1xf32> to vector<1x16x4xf32>
    %26 = vector.broadcast %24 : vector<1x1x4xf32> to vector<1x16x4xf32>
    %27 = arith.mulf %25, %26 : vector<1x16x4xf32>
    %28 = arith.addf %23, %27 : vector<1x16x4xf32>
    %29 = vector.extract_strided_slice %3 {offsets = [0, 2, 0], sizes = [1, 1, 4], strides = [1, 1, 1]} : vector<1x4x4xf32> to vector<1x1x4xf32>
    %30 = vector.broadcast %18 : vector<1x16x1xf32> to vector<1x16x4xf32>
    %31 = vector.broadcast %29 : vector<1x1x4xf32> to vector<1x16x4xf32>
    %32 = arith.mulf %30, %31 : vector<1x16x4xf32>
    %33 = arith.addf %28, %32 : vector<1x16x4xf32>
    %34 = vector.extract_strided_slice %3 {offsets = [0, 3, 0], sizes = [1, 1, 4], strides = [1, 1, 1]} : vector<1x4x4xf32> to vector<1x1x4xf32>
    %35 = vector.broadcast %19 : vector<1x16x1xf32> to vector<1x16x4xf32>
    %36 = vector.broadcast %34 : vector<1x1x4xf32> to vector<1x16x4xf32>
    %37 = arith.mulf %35, %36 : vector<1x16x4xf32>
    %38 = arith.addf %33, %37 : vector<1x16x4xf32>
    %c0_13 = arith.constant 0 : index
    %c0_14 = arith.constant 0 : index
    %c0_15 = arith.constant 0 : index
    %39 = vector.load %arg6[%c0_13, %c0_14, %c0_15] : memref<1x16x4xf32, #tpu.memory_space<vmem>>, vector<1x16x4xf32>
    tpu.vector_store %arg6[%c0_13, %c0_14, %c0_15], %38 {strides = array<i32>} : memref<1x16x4xf32, #tpu.memory_space<vmem>>, vector<1x16x4xf32>,
    return
  }
  func.func @transform_0(%arg0: i32, %arg1: i32) -> (i32, i32, i32) {
    %c0_i32 = arith.constant 0 : i32
    %c0_i32_0 = arith.constant 0 : i32
    return %arg0, %arg1, %c0_i32 : i32, i32, i32
  }
  func.func @transform_1(%arg0: i32, %arg1: i32) -> (i32, i32, i32) {
    %c0_i32 = arith.constant 0 : i32
    %c0_i32_0 = arith.constant 0 : i32
    %c0_i32_1 = arith.constant 0 : i32
    return %arg0, %c0_i32, %c0_i32_0 : i32, i32, i32
  }
  func.func @transform_2(%arg0: i32, %arg1: i32) -> (i32, i32, i32) {
    %c0_i32 = arith.constant 0 : i32
    %c0_i32_0 = arith.constant 0 : i32
    %c0_i32_1 = arith.constant 0 : i32
    return %arg0, %c0_i32, %c0_i32_0 : i32, i32, i32
  }
  func.func @transform_3(%arg0: i32, %arg1: i32) -> (i32, i32, i32) {
    %c0_i32 = arith.constant 0 : i32
    %c0_i32_0 = arith.constant 0 : i32
    %c0_i32_1 = arith.constant 0 : i32
    return %arg0, %c0_i32, %c0_i32_0 : i32, i32, i32
  }
  func.func @transform_4(%arg0: i32, %arg1: i32) -> (i32, i32, i32) {
    %c0_i32 = arith.constant 0 : i32
    %c0_i32_0 = arith.constant 0 : i32
    return %arg0, %arg1, %c0_i32 : i32, i32, i32
  }
}

</mosaic_0001>

<bundles_post_ra>
// kernel: tpu_custom_call.1
= control target key start
LH: loop header
LB: loop body
LE: loop exit
PB: predicated region body
PF: predicated region fallthrough
CT: control target
= control target key end

     0   :  { %s722_s15 = smov 0   ;;  %s724_s16 = smov 0   ;;  %s774_s0 = inlined_call_operand.vmem [shape: f32[2,16,8], index: 0, kind: input, shape index: {}]   ;;  %s775_s1 = inlined_call_operand.vmem [shape: f32[2,8,3], index: 1, kind: input, shape index: {}]   ;;  %s776_s2 = inlined_call_operand.vmem [shape: f32[2,1,3], index: 2, kind: input, shape index: {}]   ;;  %s777_s3 = inlined_call_operand.vmem [shape: f32[2,4,4], index: 3, kind: input, shape index: {}]   ;;  %s778_s4 = inlined_call_operand.vmem [shape: f32[2,16,4], index: 4, kind: output, shape index: {}]  }
   0x1   :  { %s726_s17 = smov 0  }
   0x2 LB: > { %s26_s18 = sadd.s32 1, %s687_s16  ;;  %p605_p0 = scmp.ge.s32.totalorder %s691_s17, 1  ;;  %s691_s17 = sphi %s726_s17, %s14_s17   ;;  %s687_s16 = sphi %s724_s16, %s780_s16   ;;  %s683_s15 = sphi %s722_s15, %s779_s15  }
   0x3   : > { %p28_p1 = scmp.ge.s32.totalorder %s26_s18, 2  ;;  %p209_p2 = scmp.lt.s32.totalorder %s691_s17, 3 }
   0x5   : > { %s782_s18 = smov (%p28_p1, %s26_s18), 0  ;;  %p210_p3 = pnand %p605_p0, %p209_p2 }
   0x6   : > { %p255_p4 = scmp.lt.s32.totalorder (!%p210_p3), %s683_s15, 1  ;;  %vm290_vm0 = vcmask (!%p210_p3), 64512   ;;  %v693_v3 = vmov (!%p210_p3), 0   ;;  %v694_v9 = vmov (!%p210_p3), 0.0   ;;  %s695_s30 = smov (!%p210_p3), 127   ;;  %v418_v29 = vlaneseq (!%p210_p3) }
   0x7   : > { %213 = sbr.rel (%p210_p3) target bundleno = 507 (0x1fb), region = 36  ;;  %667 = vset.pattern.permute.xlu1 (!%p210_p3), %v693_v3  ;;  %668 = vset.pattern.permute.xlu0 (!%p210_p3), %v693_v3  ;;  %s696_s5 = smov (!%p210_p3), 126   ;;  %vm478_vm3 = vcmask (!%p210_p3), 31744  }
   0x8   : > { %v419_v30 = vshrl.u32 (!%p210_p3), %v418_v29, 7 }
   0xa   : > { %v436_v32 = vsub.s32 (!%p210_p3), 1, %v419_v30  ;;  %v420_v36 = vsub.s32 (!%p210_p3), 0, %v419_v30  ;;  %v454_v38 = vsub.s32 (!%p210_p3), 2, %v419_v30  ;;  %v472_v43 = vsub.s32 (!%p210_p3), 3, %v419_v30 }
   0xe   : > { %s784_s15 = smov (!%p255_p4, %s683_s15), 1 }
   0xf   : > { %s608_s19 = sshll.u32 %s784_s15, 3  ;;  %s619_s20 = sshll.u32 %s784_s15, 4 }
  0x10   : > { %s267_s23 = scalar_lea.vmem %s775_s1, %s608_s19  ;;  %s262_s26 = scalar_lea.vmem %s774_s0, %s619_s20 }
  0x11   : > { %v287_v0 = vld [vmem:[%s267_s23] sm:$0xff]  ;;  %v286_v2 = vld [vmem:[%s262_s26 + $0x8] sm:$0xff]  ;;  %s270_s29 = scalar_lea.vmem %s776_s2, %s784_s15  ;;  %s609_s6 = sshll.u32 %s784_s15, 2 }
  0x12   : > { %v285_v1 = vld [vmem:[%s262_s26] sm:$0xff]  ;;  %624 = vmatprep.subr.mxu0 %v287_v0  ;;  %s274_s9 = scalar_lea.vmem %s777_s3, %s609_s6  ;;  %s283_s12 = scalar_lea.vmem %s778_s4, %s619_s20 }
  0x13   : > { %626 = vmatprep.mubr.msk.f32.mxu0 %vm290_vm0, %v285_v1  ;;  %625 = vmatpush3.msra.mxu0 %v287_v0  ;;  %v614_v4 = vld [vmem:[%s270_s29] ss:$0 sm:$0xff] }
  0x14   : > { %627 = vmatmul.mubr.msk.f32.vlgmr.msra.gmra.mrb[0].mxu0 %vm290_vm0, %v286_v2  ;;  %v289_v33 = vld [vmem:[%s274_s9] sm:$0xf] }
  0x15   : > { %v437_v37 = vrot.slane %v289_v33, %v436_v32  ;;  %v421_v41 = vrot.slane %v289_v33, %v420_v36  ;;  %v455_v44 = vrot.slane %v289_v33, %v454_v38  ;;  %v473_v49 = vrot.slane %v289_v33, %v472_v43 }
  0xe7   : > { %v628_v5 = vpop.f32.mrb[0].mxu0 }
  0xe8   : > { %v369_v6 = vadd.f32 1e-05, %v628_v5  ;;  %v363_v7 = vpop.f32.mrb[1].mxu0 }
  0xe9   : > { %v364_v8 = vadd.f32 1e-05, %v363_v7 }
  0xea   : > { %vm379_vm1 = vcmp.lt.f32.partialorder %v369_v6, %v614_v4 }
  0xeb   : > { %v616_v10 = vsel %vm379_vm1, 1.0, %v694_v9  ;;  %vm378_vm2 = vcmp.lt.f32.partialorder %v364_v8, %v614_v4 }
  0xec   : > { %v615_v11 = vsel %vm378_vm2, 1.0, %v694_v9  ;;  %v397_v18 = vsub.f32 1.0, %v616_v10 }
  0xed   : > { %v657_v12 = vpack.i.bf16 %v616_v10, %v615_v11  ;;  %v396_v23 = vsub.f32 1.0, %v615_v11 }
  0xef   : > { %658 = vrot.lane.b32.xlu0 %v657_v12, %s695_s30 }
  0xf3   : > { %663 = vrot.lane.b32.xlu0 %v657_v12, %s696_s5 }
 0x161   : > { %v659_v13 = vpop.permute.xlu0 %658 }
 0x162   : > { %v661_v14 = vunpack.i.h.bf16 %v659_v13  ;;  %v660_v15 = vunpack.i.l.bf16 %v659_v13 }
 0x164   : > { %v393_v16 = vmul.f32 %v661_v14, %v616_v10  ;;  %v392_v20 = vmul.f32 %v660_v15, %v615_v11 }
 0x165   : > { %v664_v17 = vpop.permute.xlu0 %663 }
 0x166   : > { %v666_v19 = vunpack.i.h.bf16 %v664_v17  ;;  %415 = vperm.xlu1 %667, %v393_v16   ;;  %v665_v22 = vunpack.i.l.bf16 %v664_v17  ;;  %v394_v25 = vsub.f32 %v615_v11, %v392_v20  ;;  %v395_v26 = vsub.f32 %v616_v10, %v393_v16 }
 0x168   : > { %v405_v21 = vmul.f32 %v666_v19, %v397_v18  ;;  %v404_v24 = vmul.f32 %v665_v22, %v396_v23 }
 0x16a   : > { %449 = vperm.xlu0 %668, %v405_v21   ;;  %410 = vperm.xlu1 %667, %v392_v20   ;;  %v407_v27 = vsub.f32 %v397_v18, %v405_v21  ;;  %v406_v28 = vsub.f32 %v396_v23, %v404_v24 }
 0x16e   : > { %426 = vperm.xlu0 %668, %v394_v25   ;;  %444 = vperm.xlu1 %667, %v404_v24  }
 0x172   : > { %467 = vperm.xlu0 %668, %v407_v27   ;;  %431 = vperm.xlu1 %667, %v395_v26  }
 0x176   : > { %462 = vperm.xlu1 %667, %v406_v28  }
 0x1e5   : > { %v416_v31 = vpop.permute.xlu1 %415 }
 0x1e6   : > { %v423_v47 = vmul.f32 %v421_v41, %v416_v31 }
 0x1e9   : > { %v450_v34 = vpop.permute.xlu0 %449  ;;  %v411_v35 = vpop.permute.xlu1 %410 }
 0x1ea   : > { %v422_v45 = vmul.f32 %v421_v41, %v411_v35  ;;  %v457_v52 = vmul.f32 %v455_v44, %v450_v34 }
 0x1ed   : > { %v427_v39 = vpop.permute.xlu0 %426  ;;  %v445_v40 = vpop.permute.xlu1 %444 }
 0x1ee   : > { %v438_v42 = vmul.f32 %v437_v37, %v427_v39  ;;  %v456_v53 = vmul.f32 %v455_v44, %v445_v40 }
 0x1f0   : > { %v440_v48 = vadd.f32 %v438_v42, %v422_v45 }
 0x1f1   : > { %v432_v46 = vpop.permute.xlu1 %431  ;;  %v468_v51 = vpop.permute.xlu0 %467 }
 0x1f2   : > { %v439_v50 = vmul.f32 %v437_v37, %v432_v46  ;;  %v458_v56 = vadd.f32 %v456_v53, %v440_v48  ;;  %v475_v57 = vmul.f32 %v473_v49, %v468_v51 }
 0x1f4   : > { %v441_v54 = vadd.f32 %v439_v50, %v423_v47 }
 0x1f5   : > { %v463_v55 = vpop.permute.xlu1 %462 }
 0x1f6   : > { %v459_v58 = vadd.f32 %v457_v52, %v441_v54  ;;  %v474_v59 = vmul.f32 %v473_v49, %v463_v55 }
 0x1f8   : > { %v477_v60 = vadd.f32 %v475_v57, %v459_v58  ;;  %v476_v61 = vadd.f32 %v474_v59, %v458_v56 }
 0x1fa   : > { %480 = vst.msk [vmem:[%s283_s12 + $0x8] sm:$0xff] %vm478_vm3, %v477_v60  ;;  %479 = vst.msk [vmem:[%s283_s12] sm:$0xff] %vm478_vm3, %v476_v61 }
 0x1fb PF: > { %s14_s17 = sadd.s32 1, %s691_s17   ;;  %s779_s15 = smov %s687_s16 }
 0x1fc   : > { %p11_p5 = scmp.ge.s32.totalorder %s14_s17, 4   ;;  %s780_s16 = smov %s782_s18 }
 0x1fe   :  { %13 = sbr.rel (!%p11_p5) target bundleno = 2 (0x2), region = 75 }

</bundles_post_ra>
